<compile_context>
chip_gen: v7x
topology: tpu7x:2x2x1
jax: 0.10.0
libtpu: 0.0.40
codegen_flags: <defaults>
</compile_context>

<pallas_src>
import functools

import jax
import jax.numpy as jnp
from jax.experimental import pallas as pl
from jax.experimental.pallas import tpu as pltpu


def _round_up(x, m):
    return ((x + m - 1) // m) * m


def _res_dilated_kernel(xb_ref, xh_ref, wd_ref, bd_ref, alpha_ref,
                        wpw_ref, bpw_ref, y_ref, sh_ref,
                        *, kwidth, dilation, tile_t, p_left, cin):
    """One (batch, time-tile) step.  Everything NCW, T on the lane axis.

    xb_ref    : (1, Cin, TILE_T)        body of the padded input tile
    xh_ref    : (1, Cin, TILE_HALO)     right halo (next TILE_HALO columns)
    wd_ref    : (fmaps, kwidth*Cin)     fused dilated-conv weight
    bd_ref    : (fmaps, 1)              dilated-conv bias   (f32)
    alpha_ref : (fmaps, 1)              PReLU slopes        (f32)
    wpw_ref   : (Cin+res_fmaps, fmaps)  fused [skip ; res] 1x1 weight
    bpw_ref   : (Cin+res_fmaps, 1)      fused 1x1 bias      (f32)
    y_ref     : (1, Cin, TILE_T)        residual output
    sh_ref    : (1, res_fmaps, TILE_T)  res-path output
    """
    # Body + halo window of the padded input: (Cin, TILE_T + TILE_HALO).
    xw = jnp.concatenate([xb_ref[0], xh_ref[0]], axis=-1)

    # Dilated conv as ONE MXU matmul: stack the kwidth time-shifted taps along
    # the contraction (sublane) axis -> K = kwidth*Cin.  The lane-offset
    # slices are XLU shuffles on an otherwise idle slot.
    if kwidth > 1:
        taps = jnp.concatenate(
            [xw[:, k * dilation:k * dilation + tile_t] for k in range(kwidth)],
            axis=0)                                          # (kwidth*Cin, TILE_T)
    else:
        taps = xw[:, :tile_t]
    h = jnp.dot(wd_ref[...], taps,
                preferred_element_type=jnp.float32) + bd_ref[...]   # (fmaps, T_T)

    # PReLU (per-channel alpha broadcast along lanes), in f32 on the VPU.
    a = jnp.where(h > 0, h, alpha_ref[...] * h)

    # Both 1x1 convs fused into one matmul; slice rows for skip / res paths.
    pw = jnp.dot(wpw_ref[...], a.astype(wpw_ref.dtype),
                 preferred_element_type=jnp.float32) + bpw_ref[...]  # (Cin+rf, T_T)

    x_orig = xw[:, p_left:p_left + tile_t].astype(jnp.float32)        # (Cin, T_T)
    y_ref[0] = (x_orig + pw[:cin, :]).astype(y_ref.dtype)
    sh_ref[0] = pw[cin:, :].astype(sh_ref.dtype)


@functools.partial(jax.jit, static_argnames=("kwidth", "dilation", "causal"))
def res_dilated_forward(x, w_dil, b_dil, alpha, w_skip, b_skip, w_res, b_res,
                        *, kwidth, dilation, causal=False):
    """ResDilatedModule.forward with norm_type=None.

    x      : (B, ninp, T)             NCW (PyTorch layout, kept end-to-end)
    w_dil  : (fmaps, ninp, kwidth)    Conv1d weight, b_dil : (fmaps,)
    alpha  : (fmaps,)                 PReLU weight
    w_skip : (ninp, fmaps, 1),  b_skip : (ninp,)
    w_res  : (res_fmaps, fmaps, 1), b_res : (res_fmaps,)
    returns (y: (B, ninp, T), sh: (B, res_fmaps, T))
    """
    B, cin, T = x.shape
    fmaps = w_dil.shape[0]
    res_fmaps = w_res.shape[0]
    cout = cin + res_fmaps

    p_total = (kwidth - 1) * dilation
    p_left = p_total if causal else (kwidth // 2) * dilation

    # Time tiling: TILE_T multiple of 128 (lane-dense stores); the halo block
    # must be a multiple of 128, >= total pad, and divide TILE_T.
    tile_halo = max(128, _round_up(max(p_total, 1), 128))
    tile_t = max(tile_halo, _round_up(min(512, _round_up(T, 128)), tile_halo))
    n_t = pl.cdiv(T, tile_t)
    t_out = n_t * tile_t
    r = tile_t // tile_halo

    # Single pad in the caller's NCW layout: conv left-pad + right pad up to
    # the tiled length plus one halo block (keeps the last halo fetch in
    # bounds); extra right zeros only affect rows >= T which are sliced off.
    pad_right = t_out + tile_halo - p_left - T
    x_pad = jnp.pad(x, ((0, 0), (0, 0), (p_left, pad_right)))

    # One-time weight re-layouts (tiny, XLA glue).  Matmul operands stay in
    # the caller's dtype (bf16 callers get bf16 DMA/MXU); biases/alpha in f32.
    dt = x.dtype
    wd = jnp.transpose(w_dil, (0, 2, 1)).reshape(fmaps, kwidth * cin).astype(dt)
    bd = b_dil.reshape(fmaps, 1).astype(jnp.float32)
    al = alpha.reshape(fmaps, 1).astype(jnp.float32)
    wpw = jnp.concatenate([w_skip[:, :, 0], w_res[:, :, 0]], axis=0).astype(dt)
    bpw = jnp.concatenate([b_skip, b_res], axis=0).reshape(cout, 1).astype(jnp.float32)

    kernel = functools.partial(_res_dilated_kernel, kwidth=kwidth,
                               dilation=dilation, tile_t=tile_t,
                               p_left=p_left, cin=cin)

    y_full, sh_full = pl.pallas_call(
        kernel,
        out_shape=(jax.ShapeDtypeStruct((B, cin, t_out), dt),
                   jax.ShapeDtypeStruct((B, res_fmaps, t_out), dt)),
        grid_spec=pltpu.PrefetchScalarGridSpec(
            num_scalar_prefetch=0,
            grid=(B, n_t),
            in_specs=[
                # body tile of the padded input
                pl.BlockSpec((1, cin, tile_t), lambda b, j: (b, 0, j)),
                # right halo: next TILE_HALO columns of the same padded array
                pl.BlockSpec((1, cin, tile_halo),
                             lambda b, j: (b, 0, (j + 1) * r)),
                # weights / biases: constant index maps -> fetched once
                pl.BlockSpec((fmaps, kwidth * cin), lambda b, j: (0, 0)),
                pl.BlockSpec((fmaps, 1), lambda b, j: (0, 0)),
                pl.BlockSpec((fmaps, 1), lambda b, j: (0, 0)),
                pl.BlockSpec((cout, fmaps), lambda b, j: (0, 0)),
                pl.BlockSpec((cout, 1), lambda b, j: (0, 0)),
            ],
            out_specs=(
                pl.BlockSpec((1, cin, tile_t), lambda b, j: (b, 0, j)),
                pl.BlockSpec((1, res_fmaps, tile_t), lambda b, j: (b, 0, j)),
            ),
        ),
        compiler_params=pltpu.CompilerParams(
            dimension_semantics=("parallel", "parallel"),
            vmem_limit_bytes=32 * 1024 * 1024),
    )(x_pad, x_pad, wd, bd, al, wpw, bpw)

    # Drop the tile round-up (identity when T % TILE_T == 0).
    return y_full[:, :, :T], sh_full[:, :, :T]


def _ref_forward(x, w_dil, b_dil, alpha, w_skip, b_skip, w_res, b_res,
                 *, kwidth, dilation, causal=False):
    """Pure-JAX reference mirroring the PyTorch forward (norm_type=None)."""
    hp = jax.lax.Precision.HIGHEST
    B, cin, T = x.shape
    if causal:
        P = (kwidth - 1) * dilation
        xp = jnp.pad(x, ((0, 0), (0, 0), (P, 0)))
    else:
        P = (kwidth // 2) * dilation
        xp = jnp.pad(x, ((0, 0), (0, 0), (P, P)))
    fmaps = w_dil.shape[0]
    h = jnp.zeros((B, fmaps, T), jnp.float32)
    for k in range(kwidth):
        h = h + jnp.einsum('bct,fc->bft',
                           xp[:, :, k * dilation:k * dilation + T],
                           w_dil[:, :, k], precision=hp)
    h = h + b_dil[None, :, None]
    a = jnp.where(h > 0, h, alpha[None, :, None] * h)
    y = x + jnp.einsum('bft,of->bot', a, w_skip[:, :, 0], precision=hp) \
          + b_skip[None, :, None]
    sh = jnp.einsum('bft,of->bot', a, w_res[:, :, 0], precision=hp) \
          + b_res[None, :, None]
    return y, sh


if __name__ == "__main__":
    key = jax.random.PRNGKey(0)
    ks = jax.random.split(key, 8)

    # Small shapes consistent with the module: NCW input.
    B, ninp = 2, 32
    fmaps, res_fmaps = 64, 32
    kwidth = 3

    w_dil = 0.1 * jax.random.normal(ks[1], (fmaps, ninp, kwidth), jnp.float32)
    b_dil = 0.1 * jax.random.normal(ks[2], (fmaps,), jnp.float32)
    alpha = 0.2 * jnp.ones((fmaps,), jnp.float32)   # non-trivial PReLU slope
    w_skip = 0.1 * jax.random.normal(ks[3], (ninp, fmaps, 1), jnp.float32)
    b_skip = 0.1 * jax.random.normal(ks[4], (ninp,), jnp.float32)
    w_res = 0.1 * jax.random.normal(ks[5], (res_fmaps, fmaps, 1), jnp.float32)
    b_res = 0.1 * jax.random.normal(ks[6], (res_fmaps,), jnp.float32)

    # (causal, T, dilation): symmetric pad, causal pad, and a multi-tile case.
    cases = [(False, 16, 2), (True, 16, 2), (False, 700, 4)]
    for causal, t_len, dil in cases:
        x = jax.random.normal(ks[0], (B, ninp, t_len), jnp.float32)
        y, sh = res_dilated_forward(x, w_dil, b_dil, alpha, w_skip, b_skip,
                                    w_res, b_res,
                                    kwidth=kwidth, dilation=dil, causal=causal)
        jax.block_until_ready((y, sh))
        assert y.shape == (B, ninp, t_len)
        assert sh.shape == (B, res_fmaps, t_len)

        y_ref, sh_ref = _ref_forward(x, w_dil, b_dil, alpha, w_skip, b_skip,
                                     w_res, b_res,
                                     kwidth=kwidth, dilation=dil, causal=causal)
        y_err = float(jnp.linalg.norm((y - y_ref).astype(jnp.float32))
                      / (jnp.linalg.norm(y_ref) + 1e-12))
        sh_err = float(jnp.linalg.norm((sh - sh_ref).astype(jnp.float32))
                       / (jnp.linalg.norm(sh_ref) + 1e-12))
        assert y_err < 1e-5 and sh_err < 1e-5, (causal, t_len, dil, y_err, sh_err)

    print("KERNEL_OK")
</pallas_src>

<mosaic_0001>
module attributes {stable_mosaic.version = 11 : i64} {
  func.func @_res_dilated_kernel(%arg0: i32, %arg1: i32, %arg2: memref<1x32x128xf32, #tpu.memory_space<vmem>>, %arg3: memref<1x32x128xf32, #tpu.memory_space<vmem>>, %arg4: memref<64x96xf32, #tpu.memory_space<vmem>>, %arg5: memref<64x1xf32, #tpu.memory_space<vmem>>, %arg6: memref<64x1xf32, #tpu.memory_space<vmem>>, %arg7: memref<64x64xf32, #tpu.memory_space<vmem>>, %arg8: memref<64x1xf32, #tpu.memory_space<vmem>>, %arg9: memref<1x32x128xf32, #tpu.memory_space<vmem>>, %arg10: memref<1x32x128xf32, #tpu.memory_space<vmem>>) attributes {dimension_semantics = [#tpu.dimension_semantics<parallel>, #tpu.dimension_semantics<parallel>], iteration_bounds = array<i64: 2, 1>, scalar_prefetch = 0 : i64, scratch_operands = 0 : i64, tpu.core_type = #tpu.core_type<tc>, window_params = [{transform_indices = @transform_0, window_bounds = array<i64: 1, 32, 128>}, {transform_indices = @transform_1, window_bounds = array<i64: 1, 32, 128>}, {pipeline_mode = #tpu.pipeline_mode<synchronous>, transform_indices = @transform_2, window_bounds = array<i64: 64, 96>}, {pipeline_mode = #tpu.pipeline_mode<synchronous>, transform_indices = @transform_3, window_bounds = array<i64: 64, 1>}, {pipeline_mode = #tpu.pipeline_mode<synchronous>, transform_indices = @transform_4, window_bounds = array<i64: 64, 1>}, {pipeline_mode = #tpu.pipeline_mode<synchronous>, transform_indices = @transform_5, window_bounds = array<i64: 64, 64>}, {pipeline_mode = #tpu.pipeline_mode<synchronous>, transform_indices = @transform_6, window_bounds = array<i64: 64, 1>}, {transform_indices = @transform_7, window_bounds = array<i64: 1, 32, 128>}, {transform_indices = @transform_8, window_bounds = array<i64: 1, 32, 128>}]} {
    %c0 = arith.constant 0 : index
    %c0_0 = arith.constant 0 : index
    %c0_1 = arith.constant 0 : index
    %0 = vector.load %arg2[%c0, %c0_0, %c0_1] : memref<1x32x128xf32, #tpu.memory_space<vmem>>, vector<1x32x128xf32>
    %1 = vector.shape_cast %0 : vector<1x32x128xf32> to vector<32x128xf32>
    %c0_2 = arith.constant 0 : index
    %c0_3 = arith.constant 0 : index
    %c0_4 = arith.constant 0 : index
    %2 = vector.load %arg3[%c0_2, %c0_3, %c0_4] : memref<1x32x128xf32, #tpu.memory_space<vmem>>, vector<1x32x128xf32>
    %3 = vector.shape_cast %2 : vector<1x32x128xf32> to vector<32x128xf32>
    %4 = tpu.concatenate %1, %3 in 1 : vector<32x128xf32>, vector<32x128xf32> -> vector<32x256xf32>
    %5 = vector.extract_strided_slice %4 {offsets = [0, 0], sizes = [32, 128], strides = [1, 1]} : vector<32x256xf32> to vector<32x128xf32>
    %6 = vector.extract_strided_slice %4 {offsets = [0, 2], sizes = [32, 128], strides = [1, 1]} : vector<32x256xf32> to vector<32x128xf32>
    %7 = vector.extract_strided_slice %4 {offsets = [0, 4], sizes = [32, 128], strides = [1, 1]} : vector<32x256xf32> to vector<32x128xf32>
    %8 = tpu.concatenate %5, %6, %7 in 0 : vector<32x128xf32>, vector<32x128xf32>, vector<32x128xf32> -> vector<96x128xf32>
    %c0_5 = arith.constant 0 : index
    %c0_6 = arith.constant 0 : index
    %9 = vector.load %arg4[%c0_5, %c0_6] : memref<64x96xf32, #tpu.memory_space<vmem>>, vector<64x96xf32>
    %cst = arith.constant dense<0.000000e+00> : vector<64x128xf32>
    %10 = tpu.matmul %9, %8, %cst {dimension_numbers = #tpu.dot_dimension_numbers<[1], [0], [0], [1], [0, 0, 1, 1], [], []>} : vector<64x96xf32>, vector<96x128xf32>, vector<64x128xf32> -> vector<64x128xf32>
    %c0_7 = arith.constant 0 : index
    %c0_8 = arith.constant 0 : index
    %11 = vector.load %arg5[%c0_7, %c0_8] : memref<64x1xf32, #tpu.memory_space<vmem>>, vector<64x1xf32>
    %12 = vector.broadcast %11 : vector<64x1xf32> to vector<64x128xf32>
    %13 = arith.addf %10, %12 : vector<64x128xf32>
    %cst_9 = arith.constant 0.000000e+00 : f32
    %14 = vector.broadcast %cst_9 : f32 to vector<64x128xf32>
    %15 = arith.cmpf ogt, %13, %14 : vector<64x128xf32>
    %c0_10 = arith.constant 0 : index
    %c0_11 = arith.constant 0 : index
    %16 = vector.load %arg6[%c0_10, %c0_11] : memref<64x1xf32, #tpu.memory_space<vmem>>, vector<64x1xf32>
    %17 = vector.broadcast %16 : vector<64x1xf32> to vector<64x128xf32>
    %18 = arith.mulf %17, %13 : vector<64x128xf32>
    %19 = arith.select %15, %13, %18 : vector<64x128xi1>, vector<64x128xf32>
    %c0_12 = arith.constant 0 : index
    %c0_13 = arith.constant 0 : index
    %20 = vector.load %arg7[%c0_12, %c0_13] : memref<64x64xf32, #tpu.memory_space<vmem>>, vector<64x64xf32>
    %cst_14 = arith.constant dense<0.000000e+00> : vector<64x128xf32>
    %21 = tpu.matmul %20, %19, %cst_14 {dimension_numbers = #tpu.dot_dimension_numbers<[1], [0], [0], [1], [0, 0, 1, 1], [], []>} : vector<64x64xf32>, vector<64x128xf32>, vector<64x128xf32> -> vector<64x128xf32>
    %c0_15 = arith.constant 0 : index
    %c0_16 = arith.constant 0 : index
    %22 = vector.load %arg8[%c0_15, %c0_16] : memref<64x1xf32, #tpu.memory_space<vmem>>, vector<64x1xf32>
    %23 = vector.broadcast %22 : vector<64x1xf32> to vector<64x128xf32>
    %24 = arith.addf %21, %23 : vector<64x128xf32>
    %25 = vector.extract_strided_slice %4 {offsets = [0, 2], sizes = [32, 128], strides = [1, 1]} : vector<32x256xf32> to vector<32x128xf32>
    %26 = vector.extract_strided_slice %24 {offsets = [0, 0], sizes = [32, 128], strides = [1, 1]} : vector<64x128xf32> to vector<32x128xf32>
    %27 = arith.addf %25, %26 : vector<32x128xf32>
    %c0_17 = arith.constant 0 : index
    %c0_18 = arith.constant 0 : index
    %c0_19 = arith.constant 0 : index
    %28 = vector.load %arg9[%c0_17, %c0_18, %c0_19] : memref<1x32x128xf32, #tpu.memory_space<vmem>>, vector<1x32x128xf32>
    %29 = vector.shape_cast %28 : vector<1x32x128xf32> to vector<32x128xf32>
    %30 = vector.shape_cast %27 : vector<32x128xf32> to vector<1x32x128xf32>
    tpu.vector_store %arg9[%c0_17, %c0_18, %c0_19], %30 {strides = array<i32>} : memref<1x32x128xf32, #tpu.memory_space<vmem>>, vector<1x32x128xf32>,
    %31 = vector.extract_strided_slice %24 {offsets = [32, 0], sizes = [32, 128], strides = [1, 1]} : vector<64x128xf32> to vector<32x128xf32>
    %c0_20 = arith.constant 0 : index
    %c0_21 = arith.constant 0 : index
    %c0_22 = arith.constant 0 : index
    %32 = vector.load %arg10[%c0_20, %c0_21, %c0_22] : memref<1x32x128xf32, #tpu.memory_space<vmem>>, vector<1x32x128xf32>
    %33 = vector.shape_cast %32 : vector<1x32x128xf32> to vector<32x128xf32>
    %34 = vector.shape_cast %31 : vector<32x128xf32> to vector<1x32x128xf32>
    tpu.vector_store %arg10[%c0_20, %c0_21, %c0_22], %34 {strides = array<i32>} : memref<1x32x128xf32, #tpu.memory_space<vmem>>, vector<1x32x128xf32>,
    return
  }
  func.func @transform_0(%arg0: i32, %arg1: i32) -> (i32, i32, i32) {
    %c0_i32 = arith.constant 0 : i32
    %c0_i32_0 = arith.constant 0 : i32
    return %arg0, %c0_i32, %arg1 : i32, i32, i32
  }
  func.func @transform_1(%arg0: i32, %arg1: i32) -> (i32, i32, i32) {
    %c1_i32 = arith.constant 1 : i32
    %0 = arith.addi %arg1, %c1_i32 : i32
    %c1_i32_0 = arith.constant 1 : i32
    %1 = arith.muli %0, %c1_i32_0 : i32
    %c0_i32 = arith.constant 0 : i32
    %c0_i32_1 = arith.constant 0 : i32
    return %arg0, %c0_i32, %1 : i32, i32, i32
  }
  func.func @transform_2(%arg0: i32, %arg1: i32) -> (i32, i32) {
    %c0_i32 = arith.constant 0 : i32
    %c0_i32_0 = arith.constant 0 : i32
    %c0_i32_1 = arith.constant 0 : i32
    return %c0_i32, %c0_i32_0 : i32, i32
  }
  func.func @transform_3(%arg0: i32, %arg1: i32) -> (i32, i32) {
    %c0_i32 = arith.constant 0 : i32
    %c0_i32_0 = arith.constant 0 : i32
    %c0_i32_1 = arith.constant 0 : i32
    return %c0_i32, %c0_i32_0 : i32, i32
  }
  func.func @transform_4(%arg0: i32, %arg1: i32) -> (i32, i32) {
    %c0_i32 = arith.constant 0 : i32
    %c0_i32_0 = arith.constant 0 : i32
    %c0_i32_1 = arith.constant 0 : i32
    return %c0_i32, %c0_i32_0 : i32, i32
  }
  func.func @transform_5(%arg0: i32, %arg1: i32) -> (i32, i32) {
    %c0_i32 = arith.constant 0 : i32
    %c0_i32_0 = arith.constant 0 : i32
    %c0_i32_1 = arith.constant 0 : i32
    return %c0_i32, %c0_i32_0 : i32, i32
  }
  func.func @transform_6(%arg0: i32, %arg1: i32) -> (i32, i32) {
    %c0_i32 = arith.constant 0 : i32
    %c0_i32_0 = arith.constant 0 : i32
    %c0_i32_1 = arith.constant 0 : i32
    return %c0_i32, %c0_i32_0 : i32, i32
  }
  func.func @transform_7(%arg0: i32, %arg1: i32) -> (i32, i32, i32) {
    %c0_i32 = arith.constant 0 : i32
    %c0_i32_0 = arith.constant 0 : i32
    return %arg0, %c0_i32, %arg1 : i32, i32, i32
  }
  func.func @transform_8(%arg0: i32, %arg1: i32) -> (i32, i32, i32) {
    %c0_i32 = arith.constant 0 : i32
    %c0_i32_0 = arith.constant 0 : i32
    return %arg0, %c0_i32, %arg1 : i32, i32, i32
  }
}

</mosaic_0001>

<bundles_post_ra>
// kernel: res_dilated_forward.1
= control target key start
LH: loop header
LB: loop body
LE: loop exit
PB: predicated region body
PF: predicated region fallthrough
CT: control target
= control target key end

     0   :  { %s1556_s27 = smov 0   ;;  %s1558_s28 = smov 0   ;;  %s1834_s0 = inlined_call_operand.vmem [shape: f32[2,32,256], index: 0, kind: input, shape index: {}, may-alias: {0,1}]   ;;  %s1835_s1 = inlined_call_operand.vmem [shape: f32[2,32,256], index: 1, kind: input, shape index: {}, may-alias: {0,1}]   ;;  %s1836_s2 = inlined_call_operand.vmem [shape: f32[64,96], index: 2, kind: input, shape index: {}]   ;;  %s1837_s3 = inlined_call_operand.vmem [shape: f32[64,1], index: 3, kind: input, shape index: {}]   ;;  %s1838_s4 = inlined_call_operand.vmem [shape: f32[64,1], index: 4, kind: input, shape index: {}]   ;;  %s1839_s5 = inlined_call_operand.vmem [shape: f32[64,64], index: 5, kind: input, shape index: {}]   ;;  %s1840_s6 = inlined_call_operand.vmem [shape: f32[64,1], index: 6, kind: input, shape index: {}]   ;;  %s1841_s7 = inlined_call_operand.vmem [shape: f32[2,32,128], index: 7, kind: output, shape index: {0}]   ;;  %s1842_s8 = inlined_call_operand.vmem [shape: f32[2,32,128], index: 8, kind: output, shape index: {1}]  }
   0x1   :  { %s1560_s29 = smov 0   ;;  %s1562_s30 = smov 0  }
   0x2   :  { %s1564_s9 = smov 0  }
   0x3 LB: > { %s31_s10 = sadd.s32 1, %s1501_s30  ;;  %p47_p1 = scmp.ne.s32.totalorder %s1493_s28, %s1489_s27  ;;  %s1505_s9 = sphi %s1564_s9, %s19_s9   ;;  %s1501_s30 = sphi %s1562_s30, %s1847_s30   ;;  %s1497_s29 = sphi %s1560_s29, %s1846_s29   ;;  %s1493_s28 = sphi %s1558_s28, %s1845_s28   ;;  %s1489_s27 = sphi %s1556_s27, %s1844_s27  }
   0x4   : > { %p33_p0 = scmp.ge.s32.totalorder %s31_s10, 2  ;;  %p48_p2 = scmp.eq.s32.totalorder %s1505_s9, 0 }
   0x5   : > { %s40_s13 = sadd.s32 1, %s1493_s28  ;;  %p1201_p5 = scmp.ge.s32.totalorder %s1505_s9, 2 }
   0x6   : > { %s1849_s10 = smov (%p33_p0, %s31_s10), 0  ;;  %p1587_p3 = por %p48_p2, %p47_p1 }
   0x7   : > { %s35_s12 = ssub.s32 %s1501_s30, %s1849_s10  ;;  %279 = sbr.rel (%p1201_p5) target bundleno = 28 (0x1c), region = 36 }
   0x8   : > { %p38_p4 = scmp.eq.s32.totalorder %s35_s12, 0 }
   0xa   : > { %s1595_s14 = scalar_select %p38_p4, %s1493_s28, %s40_s13  }
   0xe   : > { %282 = sbr.rel (!%p1587_p3) target bundleno = 21 (0x15), region = 40  ;;  %s284_s15 = sand.u32 (%p1587_p3), 1, %s1493_s28  }
   0xf   : > { %s1237_s16 = sshll.u32 (%p1587_p3), %s1501_s30, 6  ;;  %s1202_s17 = sshll.u32 (%p1587_p3), %s284_s15, 5 }
  0x10   : > { %s290_s20 = scalar_lea.vmem (%p1587_p3), %s1834_s0, %s1237_s16  ;;  %s286_s21 = scalar_lea.vmem (%p1587_p3), [#allocation2], %s1202_s17 }
  0x11   : > { %v324_v0 = vld [vmem:[%s290_s20] sm:$0xff] (%p1587_p3)  ;;  %v326_v1 = vld [vmem:[%s290_s20 + $0x10] sm:$0xff] (%p1587_p3) }
  0x12   : > { %v328_v2 = vld [vmem:[%s290_s20 + $0x20] sm:$0xff] (%p1587_p3)  ;;  %325 = vst [vmem:[%s286_s21] sm:$0xff] (%p1587_p3), %v324_v0  ;;  %327 = vst [vmem:[%s286_s21 + $0x8] sm:$0xff] (%p1587_p3), %v326_v1  ;;  %v330_v3 = vld [vmem:[%s290_s20 + $0x30] sm:$0xff] (%p1587_p3) }
  0x13   : > { %329 = vst [vmem:[%s286_s21 + $0x10] sm:$0xff] (%p1587_p3), %v328_v2  ;;  %331 = vst [vmem:[%s286_s21 + $0x18] sm:$0xff] (%p1587_p3), %v330_v3 }
  0x15 PF: > { %337 = sbr.rel (!%p1587_p3) target bundleno = 28 (0x1c), region = 78  ;;  %s339_s22 = sand.u32 (%p1587_p3), 1, %s1493_s28  }
  0x16   : > { %s1238_s23 = sshll.u32 (%p1587_p3), %s1501_s30, 6  ;;  %s1205_s24 = sshll.u32 (%p1587_p3), %s339_s22, 5 }
  0x17   : > { %s1105_s12 = scalar_lea.vmem (%p1587_p3), %s1835_s1, %s1238_s23  ;;  %s341_s13 = scalar_lea.vmem (%p1587_p3), [#allocation3], %s1205_s24 }
  0x18   : > { %v1208_v4 = vld [vmem:[%s1105_s12 + $0x8] sm:$0xff] (%p1587_p3)  ;;  %v1209_v5 = vld [vmem:[%s1105_s12 + $0x18] sm:$0xff] (%p1587_p3) }
  0x19   : > { %v1210_v6 = vld [vmem:[%s1105_s12 + $0x28] sm:$0xff] (%p1587_p3)  ;;  %381 = vst [vmem:[%s341_s13] sm:$0xff] (%p1587_p3), %v1208_v4  ;;  %383 = vst [vmem:[%s341_s13 + $0x8] sm:$0xff] (%p1587_p3), %v1209_v5  ;;  %v1211_v7 = vld [vmem:[%s1105_s12 + $0x38] sm:$0xff] (%p1587_p3) }
  0x1a   : > { %385 = vst [vmem:[%s341_s13 + $0x10] sm:$0xff] (%p1587_p3), %v1210_v6  ;;  %387 = vst [vmem:[%s341_s13 + $0x18] sm:$0xff] (%p1587_p3), %v1211_v7 }
  0x1c PF: > { %p1212_p6 = scmp.ge.s32.totalorder %s1505_s9, 1  ;;  %p392_p7 = scmp.lt.s32.totalorder %s1505_s9, 3 }
  0x1e   : > { %p393_p8 = pnand %p1212_p6, %p392_p7 }
  0x1f   : > { %s399_s11 = sand.u32 (!%p393_p8), 1, %s1489_s27   ;;  %s1507_s27 = smov (!%p393_p8), 126   ;;  %v537_v22 = vld [vmem:[%s1836_s2] sm:$0xff] (!%p393_p8)  ;;  %vm593_vm0 = vcmask (!%p393_p8), 785408   ;;  %v546_v23 = vld [vmem:[%s1837_s3 + $0x8] sm:$0xff] (!%p393_p8)  ;;  %v1509_v25 = vmov (!%p393_p8), 0  }
  0x20   : > { %396 = sbr.rel (%p393_p8) target bundleno = 874 (0x36a), region = 116  ;;  %s1213_s15 = sshll.u32 (!%p393_p8), %s399_s11, 5  ;;  %1301 = vmatprep.mubr.msk.f32.mxu0 (!%p393_p8), %vm593_vm0, %v537_v22  ;;  %v545_v24 = vld [vmem:[%s1837_s3] sm:$0xff] (!%p393_p8)  ;;  %1466 = vset.pattern.permute.xlu1 (!%p393_p8), %v1509_v25  ;;  %v732_v27 = vld [vmem:[%s1838_s4 + $0x8] sm:$0xff] (!%p393_p8)  ;;  %v547_v28 = vld [vmem:[%s1837_s3 + $0x10] sm:$0xff] (!%p393_p8)  ;;  %vm503_vm1 = vcmask (!%p393_p8), 1031168  }
  0x21   : > { %s401_s16 = scalar_lea.vmem (!%p393_p8), [#allocation2], %s1213_s15  ;;  %s408_s17 = scalar_lea.vmem (!%p393_p8), [#allocation3], %s1213_s15  ;;  %1465 = vset.pattern.permute.xlu0 (!%p393_p8), %v1509_v25  ;;  %v731_v26 = vld [vmem:[%s1838_s4] sm:$0xff] (!%p393_p8)  ;;  %v548_v29 = vld [vmem:[%s1837_s3 + $0x18] sm:$0xff] (!%p393_p8)  ;;  %v733_v30 = vld [vmem:[%s1838_s4 + $0x10] sm:$0xff] (!%p393_p8)  ;;  %vm528_vm2 = vcmask (!%p393_p8), 1014784  }
  0x22   : > { %v1615_v8 = vld [vmem:[%s401_s16 + $0x10] sm:$0xff] (!%p393_p8)  ;;  %v1619_v10 = vld [vmem:[%s401_s16] sm:$0xff] (!%p393_p8)  ;;  %v1625_v13 = vld [vmem:[%s401_s16 + $0x18] sm:$0xff] (!%p393_p8)  ;;  %s1508_s18 = smov (!%p393_p8), 124   ;;  %vm851_vm3 = vcmask (!%p393_p8), 523264   ;;  %p455_p9 = scmp.lt.s32.totalorder (!%p393_p8), %s1497_s29, 1 }
  0x23   : > { %v1617_v9 = vld [vmem:[%s408_s17 + $0x10] sm:$0xff] (!%p393_p8)  ;;  %v1623_v12 = vld [vmem:[%s408_s17] sm:$0xff] (!%p393_p8)  ;;  %v1627_v14 = vld [vmem:[%s408_s17 + $0x18] sm:$0xff] (!%p393_p8)  ;;  %v1345_v20 = vpack.c.bf16 (!%p393_p8), %v1625_v13, %v1615_v8 }
  0x24   : > { %v1435_v11 = vpack.i.bf16 (!%p393_p8), %v1617_v9, %v1615_v8  ;;  %v1425_v15 = vpack.i.bf16 (!%p393_p8), %v1623_v12, %v1619_v10  ;;  %v1631_v16 = vld [vmem:[%s401_s16 + $0x8] sm:$0xff] (!%p393_p8)  ;;  %v1440_v18 = vpack.i.bf16 (!%p393_p8), %v1627_v14, %v1625_v13  ;;  %v734_v31 = vld [vmem:[%s1838_s4 + $0x18] sm:$0xff] (!%p393_p8)  ;;  %v549_v32 = vld [vmem:[%s1837_s3 + $0x20] sm:$0xff] (!%p393_p8)  ;;  %s1510_s16 = smov (!%p393_p8), 2  }
  0x25   : > { %v1633_v17 = vld [vmem:[%s408_s17 + $0x8] sm:$0xff] (!%p393_p8)  ;;  %v1341_v19 = vpack.c.bf16 (!%p393_p8), %v1631_v16, %v1619_v10  ;;  %v735_v34 = vld [vmem:[%s1838_s4 + $0x20] sm:$0xff] (!%p393_p8)  ;;  %v551_v36 = vld [vmem:[%s1837_s3 + $0x30] sm:$0xff] (!%p393_p8) }
  0x26   : > { %1436 = vrot.lane.b32.xlu1 (!%p393_p8), %v1435_v11, %s1507_s27  ;;  %1426 = vrot.lane.b32.xlu0 (!%p393_p8), %v1425_v15, %s1507_s27  ;;  %v1430_v21 = vpack.i.bf16 (!%p393_p8), %v1633_v17, %v1631_v16  ;;  %v550_v33 = vld [vmem:[%s1837_s3 + $0x28] sm:$0xff] (!%p393_p8)  ;;  %v552_v37 = vld [vmem:[%s1837_s3 + $0x38] sm:$0xff] (!%p393_p8) }
  0x27   : > { %1342 = vmatprep.subr.bf16.mxu0 %v1341_v19  ;;  %v736_v35 = vld [vmem:[%s1838_s4 + $0x28] sm:$0xff]  ;;  %v737_v38 = vld [vmem:[%s1838_s4 + $0x30] sm:$0xff]  ;;  %v738_v39 = vld [vmem:[%s1838_s4 + $0x38] sm:$0xff]  ;;  %s1851_s29 = smov (!%p455_p9, %s1497_s29), 1 }
  0x28   : > { %1344 = vmatpush3.bf16.msra.mxu0 %v1341_v19  ;;  %v803_v40 = vld [vmem:[%s1840_s6] sm:$0xff]  ;;  %v804_v41 = vld [vmem:[%s1840_s6 + $0x8] sm:$0xff]  ;;  %v805_v42 = vld [vmem:[%s1840_s6 + $0x10] sm:$0xff]  ;;  %s1239_s25 = sshll.u32 %s1851_s29, 5 }
  0x29   : > { %1346 = vmatprep.subr.bf16.mxu0 %v1345_v20  ;;  %v806_v43 = vld [vmem:[%s1840_s6 + $0x18] sm:$0xff]  ;;  %v539_v25 = vld [vmem:[%s1836_s2 + $0x10] sm:$0xff]  ;;  %s470_s13 = scalar_lea.vmem %s1842_s8, %s1239_s25  ;;  %s462_s29 = scalar_lea.vmem %s1841_s7, %s1239_s25 }
  0x2a   : > { %1441 = vrot.lane.b32.xlu1 %v1440_v18, %s1507_s27  ;;  %1431 = vrot.lane.b32.xlu0 %v1430_v21, %s1507_s27 }
  0x2c   : > { %1348 = vmatpush3.bf16.msra.mxu0 %v1345_v20 }
  0x2e   : > { %1451 = vrot.lane.b32.xlu1 %v1430_v21, %s1508_s18  ;;  %1446 = vrot.lane.b32.xlu0 %v1425_v15, %s1508_s18 }
  0x32   : > { %1461 = vrot.lane.b32.xlu1 %v1440_v18, %s1508_s18  ;;  %1456 = vrot.lane.b32.xlu0 %v1435_v11, %s1508_s18 }
  0x36   : > { %560 = vperm.xlu1 %1466, %v546_v23   ;;  %555 = vperm.xlu0 %1465, %v545_v24   ;;  %v538_v24 = vld [vmem:[%s1836_s2 + $0x8] sm:$0xff] }
  0x3a   : > { %741 = vperm.xlu1 %1466, %v731_v26   ;;  %746 = vperm.xlu0 %1465, %v732_v27   ;;  %v540_v26 = vld [vmem:[%s1836_s2 + $0x18] sm:$0xff]  ;;  %v541_v27 = vld [vmem:[%s1836_s2 + $0x20] sm:$0xff] }
  0x3e   : > { %565 = vperm.xlu1 %1466, %v547_v28   ;;  %570 = vperm.xlu0 %1465, %v548_v29   ;;  %v542_v28 = vld [vmem:[%s1836_s2 + $0x28] sm:$0xff]  ;;  %v543_v29 = vld [vmem:[%s1836_s2 + $0x30] sm:$0xff] }
  0x42   : > { %751 = vperm.xlu1 %1466, %v733_v30   ;;  %756 = vperm.xlu0 %1465, %v734_v31   ;;  %v544_v30 = vld [vmem:[%s1836_s2 + $0x38] sm:$0xff]  ;;  %v795_v31 = vld [vmem:[%s1839_s5] sm:$0xff] }
  0x43   : > { %1329 = vmatprep.mubr.msk.f32.mxu1 %vm851_vm3, %v795_v31  ;;  %v799_v31 = vld [vmem:[%s1839_s5 + $0x20] sm:$0xff] }
  0x46   : > { %575 = vperm.xlu1 %1466, %v549_v32   ;;  %580 = vperm.xlu0 %1465, %v550_v33  }
  0x4a   : > { %761 = vperm.xlu1 %1466, %v735_v34   ;;  %766 = vperm.xlu0 %1465, %v736_v35  }
  0x4e   : > { %585 = vperm.xlu1 %1466, %v551_v36   ;;  %590 = vperm.xlu0 %1465, %v552_v37  }
  0x52   : > { %771 = vperm.xlu1 %1466, %v737_v38   ;;  %776 = vperm.xlu0 %1465, %v738_v39  }
  0x56   : > { %813 = vperm.xlu1 %1466, %v803_v40   ;;  %818 = vperm.xlu0 %1465, %v804_v41  }
  0x5a   : > { %823 = vperm.xlu1 %1466, %v805_v42   ;;  %828 = vperm.xlu0 %1465, %v806_v43  }
  0x98   : > { %v1437_v44 = vpop.permute.xlu1 %1436  ;;  %v1427_v45 = vpop.permute.xlu0 %1426 }
  0x99   : > { %v1439_v46 = vunpack.i.h.bf16 %v1437_v44  ;;  %v1438_v47 = vunpack.i.l.bf16 %v1437_v44  ;;  %v1429_v48 = vunpack.i.h.bf16 %v1427_v45  ;;  %v1428_v49 = vunpack.i.l.bf16 %v1427_v45 }
  0x9b   : > { %v504_v56 = vsel %vm503_vm1, %v1428_v49, %v1429_v48  ;;  %v506_v59 = vsel %vm503_vm1, %v1438_v47, %v1439_v46 }
  0x9c   : > { %v1442_v50 = vpop.permute.xlu1 %1441  ;;  %v1432_v53 = vpop.permute.xlu0 %1431 }
  0x9d   : > { %v1444_v51 = vunpack.i.h.bf16 %v1442_v50  ;;  %v1443_v52 = vunpack.i.l.bf16 %v1442_v50  ;;  %v1434_v54 = vunpack.i.h.bf16 %v1432_v53  ;;  %v1433_v55 = vunpack.i.l.bf16 %v1432_v53 }
  0x9f   : > { %v505_v57 = vsel %vm503_vm1, %v1433_v55, %v1434_v54  ;;  %v507_v60 = vsel %vm503_vm1, %v1443_v52, %v1444_v51 }
  0xa0   : > { %v1452_v58 = vpop.permute.xlu1 %1451  ;;  %v1349_v61 = vpack.c.bf16 %v505_v57, %v504_v56  ;;  %v1447_v0 = vpop.permute.xlu0 %1446  ;;  %v1353_v3 = vpack.c.bf16 %v507_v60, %v506_v59 }
  0xa1   : > { %v1454_v62 = vunpack.i.h.bf16 %v1452_v58  ;;  %v1453_v63 = vunpack.i.l.bf16 %v1452_v58  ;;  %v1449_v1 = vunpack.i.h.bf16 %v1447_v0  ;;  %v1448_v2 = vunpack.i.l.bf16 %v1447_v0 }
  0xa2   : > { %1350 = vmatprep.subr.bf16.mxu0 %v1349_v61 }
  0xa3   : > { %v530_v4 = vsel %vm528_vm2, %v1453_v63, %v1454_v62  ;;  %1352 = vmatpush3.bf16.msra.mxu0 %v1349_v61  ;;  %v529_v6 = vsel %vm528_vm2, %v1448_v2, %v1449_v1 }
  0xa4   : > { %v1462_v5 = vpop.permute.xlu1 %1461  ;;  %1354 = vmatprep.subr.bf16.mxu0 %v1353_v3  ;;  %v1457_v15 = vpop.permute.xlu0 %1456  ;;  %v1357_v18 = vpack.c.bf16 %v530_v4, %v529_v6 }
  0xa5   : > { %v1464_v7 = vunpack.i.h.bf16 %v1462_v5  ;;  %v1463_v11 = vunpack.i.l.bf16 %v1462_v5  ;;  %v1459_v19 = vunpack.i.h.bf16 %v1457_v15  ;;  %v1458_v20 = vunpack.i.l.bf16 %v1457_v15 }
  0xa7   : > { %v532_v21 = vsel %vm528_vm2, %v1463_v11, %v1464_v7  ;;  %1356 = vmatpush3.bf16.msra.mxu0 %v1353_v3  ;;  %v531_v22 = vsel %vm528_vm2, %v1458_v20, %v1459_v19 }
  0xa8   : > { %1358 = vmatprep.subr.bf16.mxu0 %v1357_v18  ;;  %v1361_v23 = vpack.c.bf16 %v532_v21, %v531_v22 }
  0xab   : > { %1360 = vmatpush3.bf16.msra.mxu0 %v1357_v18 }
  0xac   : > { %1362 = vmatprep.subr.bf16.mxu0 %v1361_v23 }
  0xaf   : > { %1364 = vmatpush3.bf16.msra.mxu0 %v1361_v23 }
  0xb2   : > { %1302 = vmatmul.mubr.msk.f32.vlgmr.msra.gmra.mrb[0].mxu0 %vm593_vm0, %v538_v24 }
  0xb3   : > { %1304 = vmatprep.mubr.msk.f32.mxu0 %vm593_vm0, %v539_v25 }
  0xb5   : > { %v556_v32 = vpop.permute.xlu0 %555  ;;  %v561_v33 = vpop.permute.xlu1 %560 }
  0xb6   : > { %1305 = vmatmul.mubr.msk.f32.gmra.mrb[2].mxu0 %vm593_vm0, %v540_v26 }
  0xb7   : > { %1307 = vmatprep.mubr.msk.f32.mxu0 %vm593_vm0, %v541_v27 }
  0xb9   : > { %v747_v34 = vpop.permute.xlu0 %746  ;;  %v742_v35 = vpop.permute.xlu1 %741 }
  0xba   : > { %1308 = vmatmul.mubr.msk.f32.gmra.mrb[4].mxu0 %vm593_vm0, %v542_v28  ;;  %v796_v28 = vld [vmem:[%s1839_s5 + $0x8] sm:$0xff] }
  0xbb   : > { %1310 = vmatprep.mubr.msk.f32.mxu0 %vm593_vm0, %v543_v29  ;;  %v797_v29 = vld [vmem:[%s1839_s5 + $0x10] sm:$0xff] }
  0xbd   : > { %v571_v36 = vpop.permute.xlu0 %570  ;;  %v566_v37 = vpop.permute.xlu1 %565 }
  0xbe   : > { %1311 = vmatmul.mubr.msk.f32.gmra.mrb[6].mxu0 %vm593_vm0, %v544_v30  ;;  %v798_v30 = vld [vmem:[%s1839_s5 + $0x18] sm:$0xff] }
  0xc1   : > { %v757_v38 = vpop.permute.xlu0 %756  ;;  %v752_v39 = vpop.permute.xlu1 %751 }
  0xc5   : > { %v581_v40 = vpop.permute.xlu0 %580  ;;  %v576_v41 = vpop.permute.xlu1 %575 }
  0xc9   : > { %v767_v45 = vpop.permute.xlu0 %766  ;;  %v762_v47 = vpop.permute.xlu1 %761 }
  0xcd   : > { %v591_v58 = vpop.permute.xlu0 %590  ;;  %v586_v61 = vpop.permute.xlu1 %585 }
  0xd1   : > { %v777_v18 = vpop.permute.xlu0 %776  ;;  %v772_v21 = vpop.permute.xlu1 %771 }
 0x185   : > { %v1303_v42 = vpop.f32.mrb[0].mxu0 }
 0x186   : > { %v690_v43 = vadd.f32 %v1303_v42, %v561_v33  ;;  %v684_v44 = vpop.f32.mrb[1].mxu0  ;;  %v801_v33 = vld [vmem:[%s1839_s5 + $0x30] sm:$0xff] }
 0x187   : > { %v685_v46 = vadd.f32 %v684_v44, %v556_v32  ;;  %v800_v32 = vld [vmem:[%s1839_s5 + $0x28] sm:$0xff] }
 0x188   : > { %v780_v48 = vmul.f32 %v747_v34, %v690_v43  ;;  %vm724_vm4 = vcmp.gt.f32.partialorder %v690_v43, 0.0  ;;  %v802_v34 = vld [vmem:[%s1839_s5 + $0x38] sm:$0xff] }
 0x189   : > { %v779_v49 = vmul.f32 %v742_v35, %v685_v46  ;;  %v1306_v50 = vpop.f32.mrb[2].mxu0  ;;  %vm723_vm5 = vcmp.gt.f32.partialorder %v685_v46, 0.0  ;;  %v819_v35 = vpop.permute.xlu0 %818 }
 0x18a   : > { %v700_v51 = vadd.f32 %v1306_v50, %v571_v36  ;;  %v694_v52 = vpop.f32.mrb[3].mxu0  ;;  %v788_v53 = vsel %vm724_vm4, %v690_v43, %v780_v48  ;;  %v814_v36 = vpop.permute.xlu1 %813  ;;  %v807_v48 = vld [vmem:[%s1840_s6 + $0x20] sm:$0xff] }
 0x18b   : > { %v695_v54 = vadd.f32 %v694_v52, %v566_v37  ;;  %v787_v55 = vsel %vm723_vm5, %v685_v46, %v779_v49  ;;  %v809_v52 = vld [vmem:[%s1840_s6 + $0x30] sm:$0xff] }
 0x18c   : > { %vm726_vm6 = vcmp.gt.f32.partialorder %v700_v51, 0.0  ;;  %v782_v56 = vmul.f32 %v757_v38, %v700_v51  ;;  %v1365_v57 = vpack.c.bf16 %v788_v53, %v787_v55 }
 0x18d   : > { %vm725_vm7 = vcmp.gt.f32.partialorder %v695_v54, 0.0  ;;  %v781_v59 = vmul.f32 %v752_v39, %v695_v54  ;;  %v1309_v60 = vpop.f32.mrb[4].mxu0 }
 0x18e   : > { %v710_v62 = vadd.f32 %v1309_v60, %v581_v40  ;;  %v704_v63 = vpop.f32.mrb[5].mxu0  ;;  %1366 = vmatprep.subr.bf16.mxu1 %v1365_v57  ;;  %v790_v0 = vsel %vm726_vm6, %v700_v51, %v782_v56  ;;  %v824_v43 = vpop.permute.xlu1 %823  ;;  %v810_v51 = vld [vmem:[%s1840_s6 + $0x38] sm:$0xff] }
 0x18f   : > { %v705_v1 = vadd.f32 %v704_v63, %v576_v41  ;;  %1368 = vmatpush3.bf16.msra.mxu1 %v1365_v57  ;;  %v789_v2 = vsel %vm725_vm7, %v695_v54, %v781_v59  ;;  %v829_v41 = vpop.permute.xlu0 %828 }
 0x190   : > { %vm728_vm8 = vcmp.gt.f32.partialorder %v710_v62, 0.0  ;;  %v784_v3 = vmul.f32 %v767_v45, %v710_v62  ;;  %v1369_v4 = vpack.c.bf16 %v790_v0, %v789_v2 }
 0x191   : > { %vm727_vm9 = vcmp.gt.f32.partialorder %v705_v1, 0.0  ;;  %v783_v5 = vmul.f32 %v762_v47, %v705_v1  ;;  %v1312_v6 = vpop.f32.mrb[6].mxu0  ;;  %v808_v47 = vld [vmem:[%s1840_s6 + $0x28] sm:$0xff] }
 0x192   : > { %v720_v7 = vadd.f32 %v1312_v6, %v591_v58  ;;  %v714_v11 = vpop.f32.mrb[7].mxu0  ;;  %1370 = vmatprep.subr.bf16.mxu1 %v1369_v4  ;;  %v792_v15 = vsel %vm728_vm8, %v710_v62, %v784_v3 }
 0x193   : > { %v715_v19 = vadd.f32 %v714_v11, %v586_v61  ;;  %1372 = vmatpush3.bf16.msra.mxu1 %v1369_v4  ;;  %v791_v20 = vsel %vm727_vm9, %v705_v1, %v783_v5 }
 0x194   : > { %vm730_vm10 = vcmp.gt.f32.partialorder %v720_v7, 0.0  ;;  %v786_v22 = vmul.f32 %v777_v18, %v720_v7  ;;  %v1373_v23 = vpack.c.bf16 %v792_v15, %v791_v20 }
 0x195   : > { %vm729_vm11 = vcmp.gt.f32.partialorder %v715_v19, 0.0  ;;  %v785_v24 = vmul.f32 %v772_v21, %v715_v19 }
 0x196   : > { %1374 = vmatprep.subr.bf16.mxu1 %v1373_v23  ;;  %v794_v25 = vsel %vm730_vm10, %v720_v7, %v786_v22 }
 0x197   : > { %1376 = vmatpush3.bf16.msra.mxu1 %v1373_v23  ;;  %v793_v26 = vsel %vm729_vm11, %v715_v19, %v785_v24 }
 0x198   : > { %v1377_v27 = vpack.c.bf16 %v794_v25, %v793_v26 }
 0x19a   : > { %1378 = vmatprep.subr.bf16.mxu1 %v1377_v27 }
 0x19b   : > { %1380 = vmatpush3.bf16.msra.mxu1 %v1377_v27 }
 0x19e   : > { %1330 = vmatmul.mubr.msk.f32.vlgmr.msra.gmra.mrb[0].mxu1 %vm851_vm3, %v796_v28 }
 0x19f   : > { %1332 = vmatprep.mubr.msk.f32.mxu1 %vm851_vm3, %v797_v29 }
 0x1a2   : > { %1333 = vmatmul.mubr.msk.f32.gmra.mrb[2].mxu1 %vm851_vm3, %v798_v30 }
 0x1a3   : > { %1335 = vmatprep.mubr.msk.f32.mxu1 %vm851_vm3, %v799_v31 }
 0x1a6   : > { %1336 = vmatmul.mubr.msk.f32.gmra.mrb[4].mxu1 %vm851_vm3, %v800_v32 }
 0x1a7   : > { %1338 = vmatprep.mubr.msk.f32.mxu1 %vm851_vm3, %v801_v33 }
 0x1aa   : > { %1339 = vmatmul.mubr.msk.f32.gmra.mrb[6].mxu1 %vm851_vm3, %v802_v34 }
 0x271   : > { %v1331_v37 = vpop.f32.mrb[0].mxu1 }
 0x272   : > { %v948_v38 = vadd.f32 %v1331_v37, %v819_v35  ;;  %v942_v39 = vpop.f32.mrb[1].mxu1 }
 0x273   : > { %v943_v40 = vadd.f32 %v942_v39, %v814_v36 }
 0x274   : > { %987 = vrot.lane.b32.xlu0 %v948_v38, %s1510_s16 }
 0x275   : > { %v1334_v42 = vpop.f32.mrb[2].mxu1  ;;  %985 = vrot.lane.b32.xlu1 %v943_v40, %s1510_s16 }
 0x276   : > { %v958_v44 = vadd.f32 %v1334_v42, %v829_v41  ;;  %v952_v45 = vpop.f32.mrb[3].mxu1 }
 0x277   : > { %v953_v46 = vadd.f32 %v952_v45, %v824_v43 }
 0x278   : > { %991 = vrot.lane.b32.xlu0 %v958_v44, %s1510_s16 }
 0x279   : > { %989 = vrot.lane.b32.xlu1 %v953_v46, %s1510_s16  ;;  %v1337_v49 = vpop.f32.mrb[4].mxu1 }
 0x27a   : > { %v962_v50 = vpop.f32.mrb[5].mxu1 }
 0x27c   : > { %838 = vperm.xlu0 %1465, %v808_v47  }
 0x27d   : > { %833 = vperm.xlu1 %1466, %v807_v48   ;;  %v1340_v53 = vpop.f32.mrb[6].mxu1 }
 0x27e   : > { %v972_v54 = vpop.f32.mrb[7].mxu1 }
 0x280   : > { %848 = vperm.xlu0 %1465, %v810_v51  }
 0x281   : > { %843 = vperm.xlu1 %1466, %v809_v52  }
 0x2e6   : > { %v988_v55 = vpop.permute.xlu0 %987 }
 0x2e7   : > { %v999_v56 = vadd.f32 %v988_v55, %v1631_v16  ;;  %v1000_v57 = vadd.f32 %v988_v55, %v1633_v17  ;;  %v986_v58 = vpop.permute.xlu1 %985 }
 0x2e8   : > { %v997_v59 = vadd.f32 %v986_v58, %v1619_v10  ;;  %v998_v60 = vadd.f32 %v986_v58, %v1623_v12 }
 0x2e9   : > { %1019 = vrot.lane.b32.xlu0 %v1000_v57, %s1507_s27  ;;  %1017 = vrot.lane.b32.xlu1 %v999_v56, %s1507_s27 }
 0x2ea   : > { %v992_v17 = vpop.permute.xlu0 %991 }
 0x2eb   : > { %v990_v61 = vpop.permute.xlu1 %989  ;;  %v1003_v63 = vadd.f32 %v992_v17, %v1625_v13  ;;  %v1004_v10 = vadd.f32 %v992_v17, %v1627_v14 }
 0x2ec   : > { %v1001_v62 = vadd.f32 %v990_v61, %v1615_v8  ;;  %v1002_v16 = vadd.f32 %v990_v61, %v1617_v9 }
 0x2ed   : > { %1015 = vrot.lane.b32.xlu0 %v998_v60, %s1507_s27  ;;  %1013 = vrot.lane.b32.xlu1 %v997_v59, %s1507_s27 }
 0x2f1   : > { %1023 = vrot.lane.b32.xlu0 %v1002_v16, %s1507_s27  ;;  %1021 = vrot.lane.b32.xlu1 %v1001_v62, %s1507_s27 }
 0x2f5   : > { %1027 = vrot.lane.b32.xlu0 %v1004_v10, %s1507_s27  ;;  %1025 = vrot.lane.b32.xlu1 %v1003_v63, %s1507_s27 }
 0x2fb   : > { %v839_v12 = vpop.permute.xlu0 %838 }
 0x2fc   : > { %v968_v8 = vadd.f32 %v1337_v49, %v839_v12  ;;  %v834_v9 = vpop.permute.xlu1 %833 }
 0x2fd   : > { %v963_v0 = vadd.f32 %v962_v50, %v834_v9 }
 0x2fe   : > { %1042 = vst [vmem:[%s470_s13 + $0x8] sm:$0xff] %v968_v8 }
 0x2ff   : > { %1041 = vst [vmem:[%s470_s13] sm:$0xff] %v963_v0  ;;  %v849_v1 = vpop.permute.xlu0 %848 }
 0x300   : > { %v978_v13 = vadd.f32 %v1340_v53, %v849_v1  ;;  %v844_v2 = vpop.permute.xlu1 %843 }
 0x301   : > { %v973_v14 = vadd.f32 %v972_v54, %v844_v2 }
 0x302   : > { %1044 = vst [vmem:[%s470_s13 + $0x18] sm:$0xff] %v978_v13 }
 0x303   : > { %1043 = vst [vmem:[%s470_s13 + $0x10] sm:$0xff] %v973_v14 }
 0x35b   : > { %v1020_v3 = vpop.permute.xlu0 %1019  ;;  %v1018_v4 = vpop.permute.xlu1 %1017 }
 0x35c   : > { %v1030_v5 = vsel %vm503_vm1, %v1018_v4, %v1020_v3 }
 0x35d   : > { %1038 = vst [vmem:[%s462_s29 + $0x8] sm:$0xff] %v1030_v5 }
 0x35f   : > { %v1016_v6 = vpop.permute.xlu0 %1015  ;;  %v1014_v7 = vpop.permute.xlu1 %1013 }
 0x360   : > { %v1029_v11 = vsel %vm503_vm1, %v1014_v7, %v1016_v6 }
 0x361   : > { %1037 = vst [vmem:[%s462_s29] sm:$0xff] %v1029_v11 }
 0x363   : > { %v1024_v15 = vpop.permute.xlu0 %1023  ;;  %v1022_v18 = vpop.permute.xlu1 %1021 }
 0x364   : > { %v1031_v19 = vsel %vm503_vm1, %v1022_v18, %v1024_v15 }
 0x365   : > { %1039 = vst [vmem:[%s462_s29 + $0x10] sm:$0xff] %v1031_v19 }
 0x367   : > { %v1028_v20 = vpop.permute.xlu0 %1027  ;;  %v1026_v21 = vpop.permute.xlu1 %1025 }
 0x368   : > { %v1032_v22 = vsel %vm503_vm1, %v1026_v21, %v1028_v20 }
 0x369   : > { %1040 = vst [vmem:[%s462_s29 + $0x18] sm:$0xff] %v1032_v22 }
 0x36a PF: > { %s19_s9 = sadd.s32 1, %s1505_s9   ;;  %s1844_s27 = smov %s1493_s28 }
 0x36b   : > { %p16_p10 = scmp.ge.s32.totalorder %s19_s9, 4   ;;  %s1845_s28 = smov %s1595_s14 }
 0x36c   : > { %s1846_s29 = smov %s1501_s30  ;;  %s1847_s30 = smov %s1849_s10 }
 0x36d   :  { %18 = sbr.rel (!%p16_p10) target bundleno = 3 (0x3), region = 179 }

</bundles_post_ra>
